<compile_context>
chip_gen: v6e
topology: v6e:2x2x1
jax: 0.10.0
libtpu: 0.0.40
codegen_flags: <defaults>
</compile_context>

<pallas_src>
import jax
import jax.numpy as jnp
from jax.experimental import pallas as pl
from jax.experimental.pallas import tpu as pltpu


def _make_tv_kernel(H: int, W: int, HW_pad: int, bc_tile: int, n_valid_rows: int):
    """Per-tile kernel. All closed-over values are Python scalars (no captured
    JAX arrays)."""
    eps = 1e-06 ** 2                 # self.e in the PyTorch module (1e-12)
    shift_h = HW_pad - W             # roll so position p sees x[p + W]
    shift_w = HW_pad - 1             # roll so position p sees x[p + 1]

    def kernel(h_mask_ref, w_mask_ref, x_ref, out_ref):
        # x tile: (bc_tile, HW_pad); keep math in f32 (v5e has no bf16 VPU/EUP).
        x = x_ref[...].astype(jnp.float32)

        # Vertical (H-axis) neighbor at flat offset +W; horizontal at +1.
        dh = pltpu.roll(x, shift=shift_h, axis=1) - x
        dw = pltpu.roll(x, shift=shift_w, axis=1) - x

        # Precomputed 0/1 masks (1, HW_pad) broadcast over rows: one multiply
        # per vreg instead of iota + modulo + compares.
        h_charb = h_mask_ref[...] * jnp.sqrt(dh * dh + eps)
        w_charb = w_mask_ref[...] * jnp.sqrt(dw * dw + eps)

        # Two-stage reduction: per-row first (better rounding on big tiles),
        # then drop rows that are only N-padding via a per-row mask.
        h_row = jnp.sum(h_charb, axis=1, keepdims=True)       # (bc_tile, 1)
        w_row = jnp.sum(w_charb, axis=1, keepdims=True)
        row_id = (pl.program_id(0) * bc_tile
                  + jax.lax.broadcasted_iota(jnp.int32, (bc_tile, 1), 0))
        row_valid = (row_id < n_valid_rows).astype(jnp.float32)
        h_sum = jnp.sum(h_row * row_valid)
        w_sum = jnp.sum(w_row * row_valid)

        # Per-block partial sums: sublane 0 = h partial, sublane 1 = w partial
        # (wrapper reads lane 0).  Cost is one vreg-sized op per multi-MiB tile.
        row_sel = jax.lax.broadcasted_iota(jnp.int32, (2, 128), 0)
        out_ref[0, :, :] = jnp.where(row_sel == 0, h_sum, w_sum)

    return kernel


def _choose_bc_tile(n_rows: int, hw_pad: int, itemsize: int, vmem_capacity: int) -> int:
    """Rows (B*C images) per block.

    Constraints:
      * multiple of 8 (sublane tiling), >= 8
      * 2x double-buffered input tile + ~8 tile-sized f32 temporaries + masks
        stay well under the scoped-VMEM budget (v7x only has 64 MiB physical)
      * input tile near the per-generation DMA target (amortize ~0.35us/step):
        ~6 MiB on 128 MiB-VMEM chips, ~2 MiB on 64 MiB chips
      * keep >= 4 blocks (>= 2 on small inputs) so the pipeline has depth and
        the "parallel" grid axis can split across TensorCores.
    """
    row_in_bytes = hw_pad * itemsize
    row_tmp_bytes = hw_pad * 4 * 8                 # ~8 materialized f32 temps / row
    budget = max(8 << 20, (2 * vmem_capacity) // 5)
    target_in_bytes = (2 << 20) if vmem_capacity <= (64 << 20) else (6 << 20)

    max_rows = min(
        max(8, budget // (2 * row_in_bytes + row_tmp_bytes)),
        max(8, target_in_bytes // row_in_bytes),
    )
    n8 = -(-n_rows // 8) * 8
    if n8 >= 32:
        max_rows = min(max_rows, n8 // 4)
    elif n8 >= 16:
        max_rows = min(max_rows, n8 // 2)
    return int(min(n8, max(8, (max_rows // 8) * 8)))


def l1_tvloss_charbonnier(x):
    """Charbonnier TV loss, matching L1_TVLoss_Charbonnier.forward.

    x: jnp.ndarray of shape (B, C, H, W). Returns a float32 scalar.
    """
    B, C, H, W = x.shape
    N = B * C
    HW = H * W
    HW_pad = -(-HW // 128) * 128                   # lane-dense, 128-aligned

    try:
        vmem_capacity = int(pltpu.get_tpu_info().vmem_capacity_bytes)
    except Exception:
        vmem_capacity = 64 << 20                   # conservative (v7x)

    itemsize = x.dtype.itemsize
    bc_tile = _choose_bc_tile(N, HW_pad, itemsize, vmem_capacity)
    N_pad = -(-N // bc_tile) * bc_tile
    num_blocks = N_pad // bc_tile
    # TODO(synk): for huge single images (tiny N, HW_pad*itemsize ~ VMEM budget)
    # also tile over H*W in multiples of W with a one-row halo.

    x2 = x.reshape(N, HW)                          # contiguous -> free reshape
    if N_pad != N or HW_pad != HW:
        x2 = jnp.pad(x2, ((0, N_pad - N), (0, HW_pad - HW)))

    # Precomputed neighbor-validity masks (0/1 in f32), pad columns -> 0.
    col = jnp.arange(HW_pad, dtype=jnp.int32)
    h_mask = (col < (H - 1) * W).astype(jnp.float32).reshape(1, HW_pad)
    w_mask = ((col % W != (W - 1)) & (col < HW)).astype(jnp.float32).reshape(1, HW_pad)

    tile_in_bytes = bc_tile * HW_pad * itemsize
    temp_bytes = 8 * bc_tile * HW_pad * 4          # f32 copy, 2 rolls, 2 diffs, 2 charbs, bcasts
    mask_bytes = 2 * 2 * HW_pad * 4                # two masks, double-buffered
    vmem_limit = 2 * tile_in_bytes + temp_bytes + mask_bytes + (2 << 20)
    vmem_limit = int(min(max(vmem_limit, 16 << 20),
                         max(16 << 20, vmem_capacity - (16 << 20))))

    total = N_pad * HW_pad
    cost = pl.CostEstimate(
        flops=12 * total,                          # rolls, diffs, squares, mask muls, reduces
        transcendentals=2 * total,                 # two sqrt per element (EUP)
        bytes_accessed=(N_pad * HW_pad * itemsize  # x, read once
                        + 2 * HW_pad * 4           # masks, read once
                        + num_blocks * 2 * 128 * 4),
    )

    partials = pl.pallas_call(
        _make_tv_kernel(H, W, HW_pad, bc_tile, N),
        out_shape=jax.ShapeDtypeStruct((num_blocks, 2, 128), jnp.float32),
        grid=(num_blocks,),
        in_specs=[
            pl.BlockSpec((1, HW_pad), lambda i: (0, 0)),       # h mask (VMEM-resident)
            pl.BlockSpec((1, HW_pad), lambda i: (0, 0)),       # w mask (VMEM-resident)
            pl.BlockSpec((bc_tile, HW_pad), lambda i: (i, 0)),  # x tile
        ],
        out_specs=pl.BlockSpec((1, 2, 128), lambda i: (i, 0, 0)),
        compiler_params=pltpu.CompilerParams(
            dimension_semantics=("parallel",),
            vmem_limit_bytes=vmem_limit,
        ),
        cost_estimate=cost,
    )(h_mask, w_mask, x2)

    h_count = jnp.float32(N * (H - 1) * W)
    w_count = jnp.float32(N * H * (W - 1))
    h_tv = jnp.sum(partials[:, 0, 0]) / h_count
    w_tv = jnp.sum(partials[:, 1, 0]) / w_count
    return h_tv + w_tv


def _reference(x):
    # Pure-JAX reference mirroring the PyTorch module.
    x = x.astype(jnp.float32)
    e = jnp.float32(1e-06 ** 2)
    dh = jnp.abs(x[:, :, 1:, :] - x[:, :, :-1, :])
    h_tv = jnp.mean(jnp.sqrt(dh ** 2 + e))
    dw = jnp.abs(x[:, :, :, 1:] - x[:, :, :, :-1])
    w_tv = jnp.mean(jnp.sqrt(dw ** 2 + e))
    return h_tv + w_tv


if __name__ == "__main__":
    key = jax.random.PRNGKey(0)
    x = jax.random.normal(key, (2, 4, 16, 16), dtype=jnp.float32)

    out = jax.block_until_ready(l1_tvloss_charbonnier(x))
    ref = jax.block_until_ready(_reference(x))

    assert out.shape == (), f"expected scalar, got shape {out.shape}"
    assert jnp.allclose(out, ref, rtol=1e-5, atol=1e-6), (out, ref)
    print("KERNEL_OK")
</pallas_src>

<mosaic_0001>
module attributes {stable_mosaic.version = 11 : i64} {
  func.func @kernel(%arg0: i32, %arg1: memref<1x256xf32, #tpu.memory_space<vmem>>, %arg2: memref<1x256xf32, #tpu.memory_space<vmem>>, %arg3: memref<8x256xf32, #tpu.memory_space<vmem>>, %arg4: memref<1x2x128xf32, #tpu.memory_space<vmem>>) attributes {dimension_semantics = [#tpu.dimension_semantics<parallel>], iteration_bounds = array<i64: 1>, scalar_prefetch = 0 : i64, scratch_operands = 0 : i64, tpu.core_type = #tpu.core_type<tc>, window_params = [{pipeline_mode = #tpu.pipeline_mode<synchronous>, transform_indices = @transform_0, window_bounds = array<i64: 1, 256>}, {pipeline_mode = #tpu.pipeline_mode<synchronous>, transform_indices = @transform_1, window_bounds = array<i64: 1, 256>}, {transform_indices = @transform_2, window_bounds = array<i64: 8, 256>}, {transform_indices = @transform_3, window_bounds = array<i64: 1, 2, 128>}]} {
    %c0 = arith.constant 0 : index
    %c0_0 = arith.constant 0 : index
    %0 = vector.load %arg3[%c0, %c0_0] : memref<8x256xf32, #tpu.memory_space<vmem>>, vector<8x256xf32>
    %c240_i32 = arith.constant 240 : i32
    %1 = tpu.dynamic_rotate %0 by %c240_i32 dim 1 : vector<8x256xf32>, i32 -> vector<8x256xf32>
    %2 = arith.subf %1, %0 : vector<8x256xf32>
    %c255_i32 = arith.constant 255 : i32
    %3 = tpu.dynamic_rotate %0 by %c255_i32 dim 1 : vector<8x256xf32>, i32 -> vector<8x256xf32>
    %4 = arith.subf %3, %0 : vector<8x256xf32>
    %c0_1 = arith.constant 0 : index
    %c0_2 = arith.constant 0 : index
    %5 = vector.load %arg1[%c0_1, %c0_2] : memref<1x256xf32, #tpu.memory_space<vmem>>, vector<1x256xf32>
    %6 = arith.mulf %2, %2 : vector<8x256xf32>
    %cst = arith.constant 9.99999996E-13 : f32
    %7 = vector.broadcast %cst : f32 to vector<8x256xf32>
    %8 = arith.addf %6, %7 : vector<8x256xf32>
    %9 = math.sqrt %8 : vector<8x256xf32>
    %10 = vector.broadcast %5 : vector<1x256xf32> to vector<8x256xf32>
    %11 = arith.mulf %10, %9 : vector<8x256xf32>
    %c0_3 = arith.constant 0 : index
    %c0_4 = arith.constant 0 : index
    %12 = vector.load %arg2[%c0_3, %c0_4] : memref<1x256xf32, #tpu.memory_space<vmem>>, vector<1x256xf32>
    %13 = arith.mulf %4, %4 : vector<8x256xf32>
    %cst_5 = arith.constant 9.99999996E-13 : f32
    %14 = vector.broadcast %cst_5 : f32 to vector<8x256xf32>
    %15 = arith.addf %13, %14 : vector<8x256xf32>
    %16 = math.sqrt %15 : vector<8x256xf32>
    %17 = vector.broadcast %12 : vector<1x256xf32> to vector<8x256xf32>
    %18 = arith.mulf %17, %16 : vector<8x256xf32>
    %cst_6 = arith.constant dense<0.000000e+00> : vector<8xf32>
    %19 = vector.multi_reduction <add>, %11, %cst_6 [1] : vector<8x256xf32> to vector<8xf32>
    %20 = vector.shape_cast %19 : vector<8xf32> to vector<8x1xf32>
    %cst_7 = arith.constant dense<0.000000e+00> : vector<8xf32>
    %21 = vector.multi_reduction <add>, %18, %cst_7 [1] : vector<8x256xf32> to vector<8xf32>
    %22 = vector.shape_cast %21 : vector<8xf32> to vector<8x1xf32>
    %c8_i32 = arith.constant 8 : i32
    %23 = arith.muli %arg0, %c8_i32 : i32
    %24 = tpu.iota {dimensions = array<i32: 0>} : vector<8x1xi32>
    %25 = vector.broadcast %23 : i32 to vector<8x1xi32>
    %26 = arith.addi %25, %24 : vector<8x1xi32>
    %c8_i32_8 = arith.constant 8 : i32
    %27 = vector.broadcast %c8_i32_8 : i32 to vector<8x1xi32>
    %28 = arith.cmpi slt, %26, %27 : vector<8x1xi32>
    %29 = arith.extui %28 : vector<8x1xi1> to vector<8x1xi32>
    %30 = arith.sitofp %29 : vector<8x1xi32> to vector<8x1xf32>
    %31 = arith.mulf %20, %30 : vector<8x1xf32>
    %32 = vector.shape_cast %31 : vector<8x1xf32> to vector<1x8x1xf32>
    %cst_9 = arith.constant dense<0.000000e+00> : vector<1xf32>
    %33 = vector.multi_reduction <add>, %32, %cst_9 [1, 2] : vector<1x8x1xf32> to vector<1xf32>
    %34 = vector.shape_cast %33 : vector<1xf32> to vector<1x1x1xf32>
    %35 = vector.extract %34[0, 0, 0] : f32 from vector<1x1x1xf32>
    %36 = arith.mulf %22, %30 : vector<8x1xf32>
    %37 = vector.shape_cast %36 : vector<8x1xf32> to vector<1x8x1xf32>
    %cst_10 = arith.constant dense<0.000000e+00> : vector<1xf32>
    %38 = vector.multi_reduction <add>, %37, %cst_10 [1, 2] : vector<1x8x1xf32> to vector<1xf32>
    %39 = vector.shape_cast %38 : vector<1xf32> to vector<1x1x1xf32>
    %40 = vector.extract %39[0, 0, 0] : f32 from vector<1x1x1xf32>
    %41 = tpu.iota {dimensions = array<i32: 0>} : vector<2x128xi32>
    %c0_i32 = arith.constant 0 : i32
    %42 = vector.broadcast %c0_i32 : i32 to vector<2x128xi32>
    %43 = arith.cmpi eq, %41, %42 : vector<2x128xi32>
    %44 = vector.broadcast %35 : f32 to vector<2x128xf32>
    %45 = vector.broadcast %40 : f32 to vector<2x128xf32>
    %46 = arith.select %43, %44, %45 : vector<2x128xi1>, vector<2x128xf32>
    %c0_11 = arith.constant 0 : index
    %c0_12 = arith.constant 0 : index
    %c0_13 = arith.constant 0 : index
    %47 = vector.load %arg4[%c0_11, %c0_12, %c0_13] : memref<1x2x128xf32, #tpu.memory_space<vmem>>, vector<1x2x128xf32>
    %48 = vector.shape_cast %47 : vector<1x2x128xf32> to vector<2x128xf32>
    %49 = vector.shape_cast %46 : vector<2x128xf32> to vector<1x2x128xf32>
    tpu.vector_store %arg4[%c0_11, %c0_12, %c0_13], %49 {strides = array<i32>} : memref<1x2x128xf32, #tpu.memory_space<vmem>>, vector<1x2x128xf32>,
    return
  }
  func.func @transform_0(%arg0: i32) -> (i32, i32) {
    %c0_i32 = arith.constant 0 : i32
    %c0_i32_0 = arith.constant 0 : i32
    %c0_i32_1 = arith.constant 0 : i32
    return %c0_i32, %c0_i32_0 : i32, i32
  }
  func.func @transform_1(%arg0: i32) -> (i32, i32) {
    %c0_i32 = arith.constant 0 : i32
    %c0_i32_0 = arith.constant 0 : i32
    %c0_i32_1 = arith.constant 0 : i32
    return %c0_i32, %c0_i32_0 : i32, i32
  }
  func.func @transform_2(%arg0: i32) -> (i32, i32) {
    %c0_i32 = arith.constant 0 : i32
    %c0_i32_0 = arith.constant 0 : i32
    return %arg0, %c0_i32 : i32, i32
  }
  func.func @transform_3(%arg0: i32) -> (i32, i32, i32) {
    %c0_i32 = arith.constant 0 : i32
    %c0_i32_0 = arith.constant 0 : i32
    %c0_i32_1 = arith.constant 0 : i32
    return %arg0, %c0_i32, %c0_i32_0 : i32, i32, i32
  }
}

</mosaic_0001>

<bundles_post_ra>
// kernel: tpu_custom_call.1
= control target key start
LH: loop header
LB: loop body
LE: loop exit
PB: predicated region body
PF: predicated region fallthrough
CT: control target
= control target key end

     0   :  { %8 = vsyncpa [#allocation3], 0  ;;  %s341_s0 = inlined_call_operand.hbm [shape: f32[1,256], index: 0, kind: input, shape index: {}]   ;;  %s342_s1 = inlined_call_operand.hbm [shape: f32[1,256], index: 1, kind: input, shape index: {}]   ;;  %s343_s2 = inlined_call_operand.hbm [shape: f32[8,256], index: 2, kind: input, shape index: {}]   ;;  %s344_s3 = inlined_call_operand.hbm [shape: f32[1,2,128], index: 3, kind: output, shape index: {}]  }
   0x1   :  { %9 = vsyncpa [#allocation6], 0 }
   0x2   :  { %10 = vsyncpa [#allocation4], 0  ;;  %s298_s12 = smov [#allocation5]   ;;  %s299_s14 = smov [#allocation2]  }
   0x3   :  { %s27_s13 = sshll.u32 %s298_s12, 4  ;;  %s17_s15 = sshll.u32 %s299_s14, 4  ;;  %s28_s13 = int_to_ptr.vmem [resolvable:$true] %s27_s13  ;;  %s18_s15 = int_to_ptr.vmem [resolvable:$true] %s17_s15 }
   0x4   :  { %s220_s16 = scalar_lea.vmem %s28_s13, 32  ;;  %p225_p1 = scmp.lt.s32.totalorder %s28_s13, %s28_s13 }
   0x5   :  { %p221_p0 = scmp.ne.s32.totalorder %s28_s13, %s220_s16  ;;  %p226_p2 = scmp.lt.s32.totalorder %s220_s16, %s220_s16 }
   0x7   :  { %p227_p3 = por %p226_p2, %p225_p1 }
   0x9   :  { %p228_p4 = pnand %p227_p3, %p221_p0 }
   0xb   :  { %231 = shalt.err (!%p228_p4)
}
   0xc   :  { %30 = dma.hbm_to_vmem [thread:$0]  %s342_s1, 32, %s28_s13, [#allocation6]  }
   0xd   :  { %s240_s19 = scalar_lea.vmem %s18_s15, 32  ;;  %p245_p6 = scmp.lt.s32.totalorder %s18_s15, %s18_s15 }
   0xe   :  { %p241_p5 = scmp.ne.s32.totalorder %s18_s15, %s240_s19  ;;  %p246_p7 = scmp.lt.s32.totalorder %s240_s19, %s240_s19 }
  0x10   :  { %p247_p8 = por %p246_p7, %p245_p6 }
  0x12   :  { %p248_p9 = pnand %p247_p8, %p241_p5 }
  0x14   :  { %251 = shalt.err (!%p248_p9)
}
  0x15   :  { %20 = dma.hbm_to_vmem [thread:$0]  %s341_s0, 32, %s18_s15, [#allocation3]  }
  0x16   :  { %s300_s22 = smov [#allocation7]  }
  0x17   :  { %s37_s23 = sshll.u32 %s300_s22, 4  ;;  %s38_s23 = int_to_ptr.vmem [resolvable:$true] %s37_s23 }
  0x18   :  { %s260_s24 = scalar_lea.vmem %s38_s23, 256  ;;  %p265_p11 = scmp.lt.s32.totalorder %s38_s23, %s38_s23 }
  0x19   :  { %p261_p10 = scmp.ne.s32.totalorder %s38_s23, %s260_s24  ;;  %p266_p12 = scmp.lt.s32.totalorder %s260_s24, %s260_s24 }
  0x1b   :  { %p267_p13 = por %p266_p12, %p265_p11 }
  0x1d   :  { %p268_p0 = pnand %p267_p13, %p261_p10 }
  0x1f   :  { %271 = shalt.err (!%p268_p0)
}
  0x20   :  { %40 = dma.hbm_to_vmem [thread:$0]  %s343_s2, 256, %s38_s23, [#allocation6]  }
  0x21   :  { %292 = dma.done.wait [#allocation3], 32  }
  0x22   :  { %293 = vsyncadd [#allocation3], 4294967264 }
  0x23   :  { %294 = dma.done.wait [#allocation6], 288  }
  0x24   :  { %295 = vsyncadd [#allocation6], 4294967008  ;;  %v50_v0 = vld [vmem:[#allocation7] sm:$0xff]  ;;  %s301_s0 = smov 127   ;;  %s302_s26 = smov 112   ;;  %v51_v1 = vld [vmem:[#allocation7 + $0x8] sm:$0xff]  ;;  %v56_v2 = vlaneseq }
  0x25   :  { %63 = vrot.lane.b32.xlu1 %v50_v0, %s301_s0  ;;  %52 = vrot.lane.b32.xlu0 %v50_v0, %s302_s26  ;;  %v104_v27 = vld [vmem:[#allocation5] sm:$0x3]  ;;  %v72_v28 = vld [vmem:[#allocation2] sm:$0x3]  ;;  %vm151_vm10 = vcmask 7168   ;;  %s303_s27 = smov [#allocation8]  }
  0x26   :  { %v57_v3 = vand.u32 127, %v56_v2  ;;  %v333_v24 = vshrl.u32 %v56_v2, 7  ;;  %s184_s28 = sshll.u32 %s303_s27, 4  ;;  %s185_s28 = int_to_ptr.vmem [resolvable:$true] %s184_s28 }
  0x27   :  { %s272_s30 = scalar_lea.vmem %s185_s28, 32  ;;  %p277_p2 = scmp.lt.s32.totalorder %s185_s28, %s185_s28 }
  0x28   :  { %vm67_vm0 = vcmp.lt.s32.totalorder %v57_v3, 127  ;;  %vm58_vm1 = vcmp.lt.s32.totalorder %v57_v3, 112  ;;  %v94_v25 = vsub.s32 0, %v333_v24  ;;  %v98_v26 = vsub.s32 1, %v333_v24  ;;  %p273_p1 = scmp.ne.s32.totalorder %s185_s28, %s272_s30  ;;  %p278_p3 = scmp.lt.s32.totalorder %s272_s30, %s272_s30 }
  0x29   :  { %65 = vrot.lane.b32.xlu1 %v51_v1, %s301_s0  ;;  %54 = vrot.lane.b32.xlu0 %v51_v1, %s302_s26  ;;  %vm173_vm11 = vcmp.eq.s32.totalorder %v333_v24, 0 }
  0x2a   :  { %v127_v29 = vrot.slane %v104_v27, %v94_v25  ;;  %v131_v31 = vrot.slane %v104_v27, %v98_v26  ;;  %v95_v32 = vrot.slane %v72_v28, %v94_v25  ;;  %v99_v33 = vrot.slane %v72_v28, %v98_v26  ;;  %p279_p4 = por %p278_p3, %p277_p2 }
  0x2c   :  { %p280_p5 = pnand %p279_p4, %p273_p1 }
  0x97   :  { %v64_v4 = vpop.permute.xlu1 %63  ;;  %v53_v5 = vpop.permute.xlu0 %52 }
  0x9b   :  { %v66_v6 = vpop.permute.xlu1 %65  ;;  %v55_v7 = vpop.permute.xlu0 %54 }
  0x9c   :  { %v68_v8 = vsel %vm67_vm0, %v64_v4, %v66_v6  ;;  %v69_v9 = vsel %vm67_vm0, %v66_v6, %v64_v4  ;;  %v59_v10 = vsel %vm58_vm1, %v53_v5, %v55_v7  ;;  %v60_v11 = vsel %vm58_vm1, %v55_v7, %v53_v5 }
  0x9d   :  { %v70_v12 = vsub.f32 %v68_v8, %v50_v0  ;;  %v71_v13 = vsub.f32 %v69_v9, %v51_v1  ;;  %v61_v14 = vsub.f32 %v59_v10, %v50_v0  ;;  %v62_v15 = vsub.f32 %v60_v11, %v51_v1 }
  0x9f   :  { %v105_v16 = vmul.f32 %v70_v12, %v70_v12  ;;  %v106_v17 = vmul.f32 %v71_v13, %v71_v13  ;;  %v73_v18 = vmul.f32 %v61_v14, %v61_v14  ;;  %v74_v19 = vmul.f32 %v62_v15, %v62_v15 }
  0xa1   :  { %v107_v20 = vadd.f32 1e-12, %v105_v16  ;;  %v108_v21 = vadd.f32 1e-12, %v106_v17  ;;  %v75_v22 = vadd.f32 1e-12, %v73_v18 }
  0xa2   :  { %v76_v23 = vadd.f32 1e-12, %v74_v19 }
  0xa3   :  { %204 = vrsqrt.f32 %v107_v20  ;;  %vm111_vm2 = vcmp.eq.f32.partialorder %v107_v20, inf  ;;  %vm113_vm3 = vcmp.eq.f32.partialorder %v107_v20, 0.0  ;;  %v114_v36 = vand.u32 2147483648, %v107_v20 }
  0xa4   :  { %206 = vrsqrt.f32 %v108_v21  ;;  %vm118_vm4 = vcmp.eq.f32.partialorder %v108_v21, inf  ;;  %vm120_vm5 = vcmp.eq.f32.partialorder %v108_v21, 0.0  ;;  %v121_v39 = vand.u32 2147483648, %v108_v21 }
  0xa5   :  { %208 = vrsqrt.f32 %v75_v22  ;;  %vm79_vm6 = vcmp.eq.f32.partialorder %v75_v22, inf  ;;  %vm81_vm7 = vcmp.eq.f32.partialorder %v75_v22, 0.0  ;;  %v82_v43 = vand.u32 2147483648, %v75_v22 }
  0xa6   :  { %210 = vrsqrt.f32 %v76_v23  ;;  %vm86_vm8 = vcmp.eq.f32.partialorder %v76_v23, inf  ;;  %v89_v50 = vand.u32 2147483648, %v76_v23  ;;  %vm88_vm9 = vcmp.eq.f32.partialorder %v76_v23, 0.0 }
  0xb0   :  { %v205_v30 = vpop.eup %204 }
  0xb1   :  { %v207_v34 = vpop.eup %206  ;;  %v110_v35 = vmul.f32 %v205_v30, %v107_v20 }
  0xb2   :  { %v209_v37 = vpop.eup %208  ;;  %v117_v38 = vmul.f32 %v207_v34, %v108_v21 }
  0xb3   :  { %v211_v40 = vpop.eup %210  ;;  %v112_v41 = vsel %vm111_vm2, %v107_v20, %v110_v35  ;;  %v78_v42 = vmul.f32 %v209_v37, %v75_v22 }
  0xb4   :  { %v115_v44 = vsel %vm113_vm3, %v114_v36, %v112_v41  ;;  %v119_v45 = vsel %vm118_vm4, %v108_v21, %v117_v38  ;;  %v85_v46 = vmul.f32 %v211_v40, %v76_v23 }
  0xb5   :  { %v122_v47 = vsel %vm120_vm5, %v121_v39, %v119_v45  ;;  %v134_v48 = vmul.f32 %v127_v29, %v115_v44  ;;  %v80_v49 = vsel %vm79_vm6, %v75_v22, %v78_v42 }
  0xb6   :  { %v135_v51 = vmul.f32 %v131_v31, %v122_v47  ;;  %v83_v52 = vsel %vm81_vm7, %v82_v43, %v80_v49  ;;  %v87_v53 = vsel %vm86_vm8, %v76_v23, %v85_v46 }
  0xb7   :  { %v90_v54 = vsel %vm88_vm9, %v89_v50, %v87_v53  ;;  %v102_v55 = vmul.f32 %v95_v32, %v83_v52 }
  0xb8   :  { %v139_v56 = vadd.f32 %v135_v51, %v134_v48  ;;  %v103_v57 = vmul.f32 %v99_v33, %v90_v54 }
  0xba   :  { %140 = vadd.xlane.f32.xlu1 %v139_v56  ;;  %v136_v58 = vadd.f32 %v103_v57, %v102_v55 }
  0xbc   :  { %137 = vadd.xlane.f32.xlu0 %v136_v58 }
 0x143   :  { %v141_v61 = vpop.xlane.xlu1 %140 }
 0x144   :  { %v163_v62 = vsel %vm151_vm10, %v141_v61, 0.0 }
 0x145   :  { %v138_v59 = vpop.xlane.xlu0 %137 }
 0x146   :  { %v152_v60 = vsel %vm151_vm10, %v138_v59, 0.0 }
 0x147   :  { %153 = vadd.xlane.f32.xlu0 %v152_v60 }
 0x14b   :  { %164 = vadd.xlane.f32.xlu0 %v163_v62 }
 0x1d0   :  { %v154_v63 = vpop.xlane.xlu0 %153 }
 0x1d1   :  { %v155_v0 = vrot.slane %v154_v63, 4 }
 0x1d3   :  { %v156_v1 = vadd.f32 %v155_v0, %v154_v63 }
 0x1d4   :  { %v165_v2 = vpop.xlane.xlu0 %164 }
 0x1d5   :  { %v157_v3 = vrot.slane %v156_v1, 2  ;;  %v166_v4 = vrot.slane %v165_v2, 4 }
 0x1d7   :  { %v167_v5 = vadd.f32 %v166_v4, %v165_v2  ;;  %v158_v6 = vadd.f32 %v157_v3, %v156_v1 }
 0x1d9   :  { %v168_v7 = vrot.slane %v167_v5, 2  ;;  %v159_v8 = vrot.slane %v158_v6, 1 }
 0x1db   :  { %v169_v9 = vadd.f32 %v168_v7, %v167_v5  ;;  %v160_v10 = vadd.f32 %v159_v8, %v158_v6 }
 0x1dd   :  { %194 = vpush %v160_v10  ;;  %v170_v11 = vrot.slane %v169_v9, 1 }
 0x1df   :  { %v171_v12 = vadd.f32 %v170_v11, %v169_v9 }
 0x1e1   :  { %196 = vpush %v171_v12 }
 0x20e   :  { %s195_s2 = spop %194 }
 0x20f   :  { %v174_v13 = vstv %s195_s2 }
 0x212   :  { %s197_s29 = spop %196 }
 0x213   :  { %v175_v14 = vstv %s197_s29 }
 0x214   :  { %v176_v15 = vsel %vm173_vm11, %v174_v13, %v175_v14 }
 0x215   :  { %177 = vst [vmem:[#allocation8] sm:$0x3] %v176_v15 }
 0x216   :  { %283 = shalt.err (!%p280_p5)
}
 0x217   :  { %187 = dma.vmem_to_hbm [thread:$0]  %s185_s28, 32, %s344_s3, [#allocation4]  }
 0x218   :  { %296 = dma.done.wait [#allocation4], 32  }
 0x219   :  { %297 = vsyncadd [#allocation4], 4294967264 }
 0x21a   :  { %191 = vsyncpa [#allocation3], 1 }
 0x21b   :  { %192 = vsyncpa [#allocation6], 1 }
 0x21c   :  { %193 = vsyncpa [#allocation4], 1 }

</bundles_post_ra>
